<compile_context>
chip_gen: v7x
topology: tpu7x:2x2x1
jax: 0.10.0
libtpu: 0.0.40
codegen_flags: <defaults>
</compile_context>

<pallas_src>
import jax
import jax.numpy as jnp
from jax.experimental import pallas as pl
from jax.experimental.pallas import tpu as pltpu


def _vmem_capacity_bytes():
    try:
        return int(pltpu.get_tpu_info().vmem_capacity_bytes)
    except Exception:
        return 64 * 1024 * 1024  # conservative (v7x-sized) fallback


def _epilogue(pooled_f32, w_ref, b_ref, o_ref, c):
    """pooled_f32: (C,1) f32 -> o_ref (1,E) = sigmoid(pooled @ W^T + b)."""
    if c >= 128:
        # Wide-C heads: use the idle MXU instead of a long sublane-reduce chain.
        logits = jax.lax.dot_general(
            pooled_f32, w_ref[...], (((0,), (0,)), ((), ())),
            preferred_element_type=jnp.float32)                    # (1, E)
    else:
        logits = jnp.sum(pooled_f32 * w_ref[...], axis=0, keepdims=True)  # (1, E)
    o_ref[...] = jax.nn.sigmoid(logits + b_ref[...]).astype(o_ref.dtype)


def _make_single_block_kernel(inv_hw, c):
    def kernel(x_ref, w_ref, b_ref, o_ref):
        # x_ref: (C, HW) full slab; block == full array, so no OOB lanes to mask.
        xb = x_ref[...].astype(jnp.float32)
        pooled = jnp.sum(xb, axis=1, keepdims=True) * inv_hw       # (C, 1)
        _epilogue(pooled, w_ref, b_ref, o_ref, c)
    return kernel


def _make_chunked_kernel(hw_total, chunk, inv_hw, c):
    needs_mask = (hw_total % chunk) != 0

    def kernel(x_ref, w_ref, b_ref, o_ref, acc_ref):
        # x_ref: (C, chunk)  w_ref: (C, E)  b_ref: (1, E)  o_ref: (1, E)
        # acc_ref: (C, 1) f32 scratch, lives across the reduction grid axis.
        k = pl.program_id(0)
        last = pl.num_programs(0) - 1

        @pl.when(k == 0)
        def _init():
            acc_ref[...] = jnp.zeros_like(acc_ref)

        xb = x_ref[...].astype(jnp.float32)        # cast in-vreg after the DMA

        if needs_mask:
            # Full tiles: plain accumulate (keeps VALU slot off the critical path).
            @pl.when(k < last)
            def _full_tile():
                acc_ref[...] += jnp.sum(xb, axis=1, keepdims=True)

            # Tail tile only: zero the padded (OOB) lanes before the reduce.
            @pl.when(k == last)
            def _tail_tile():
                lane = jax.lax.broadcasted_iota(jnp.int32, xb.shape, 1)
                valid = hw_total - k * chunk
                masked = jnp.where(lane < valid, xb, 0.0)
                acc_ref[...] += jnp.sum(masked, axis=1, keepdims=True)
        else:
            acc_ref[...] += jnp.sum(xb, axis=1, keepdims=True)

        @pl.when(k == last)
        def _finalize():
            _epilogue(acc_ref[...] * inv_hw, w_ref, b_ref, o_ref, c)

    return kernel


def routing_forward(x_nchw, weight, bias, *, max_tile_bytes=None):
    """x_nchw: (1, C, H, W); weight: (E, C); bias: (E,) -> sigmoid logits (E,)."""
    n, c, h, w = x_nchw.shape
    assert n == 1, "torch.flatten + Linear(c_in) implies batch size 1"
    hw = h * w
    x2d = x_nchw.reshape(c, hw)                       # native dtype; no up-cast
    w_t = weight.T.astype(jnp.float32)                # (C, E)
    b2d = bias.reshape(1, -1).astype(jnp.float32)     # (1, E)
    e = weight.shape[0]

    itemsize = jnp.dtype(x2d.dtype).itemsize
    x_bytes = c * hw * itemsize
    inv_hw = 1.0 / float(hw)

    vmem_cap = _vmem_capacity_bytes()
    if max_tile_bytes is None:
        # ~16 MiB tiles on v5e/v6e (128 MiB VMEM), ~8 MiB on v7x (64 MiB VMEM).
        max_tile_bytes = (16 << 20) if vmem_cap >= (96 << 20) else (8 << 20)

    # Resident (non-streamed) footprint: weight/bias/out (double-buffered) + acc.
    resident_bytes = 2 * (c * e * 4 + e * 4 + e * 4) + c * 4

    cost = pl.CostEstimate(
        flops=c * hw + 2 * c * e,
        transcendentals=e,
        bytes_accessed=x_bytes + (c * e + 2 * e) * 4,
    )

    if x_bytes <= max_tile_bytes:
        # ---- Single-block fast path (common CondConv routing maps). ----
        f32_temp = c * hw * 4 if itemsize < 4 else 0          # in-kernel cast temp
        vmem_limit = min(vmem_cap, 2 * x_bytes + f32_temp + resident_bytes + (4 << 20))
        out = pl.pallas_call(
            _make_single_block_kernel(inv_hw, c),
            out_shape=jax.ShapeDtypeStruct((1, e), jnp.float32),
            grid=(1,),
            in_specs=[
                pl.BlockSpec((c, hw), lambda k: (0, 0)),       # whole slab (full dims)
                pl.BlockSpec((c, e), lambda k: (0, 0)),        # resident weight
                pl.BlockSpec((1, e), lambda k: (0, 0)),        # resident bias
            ],
            out_specs=pl.BlockSpec((1, e), lambda k: (0, 0)),
            compiler_params=pltpu.CompilerParams(
                dimension_semantics=("arbitrary",),
                vmem_limit_bytes=vmem_limit,
            ),
            cost_estimate=cost,
        )(x2d, w_t, b2d)
        return out.reshape(e)

    # ---- Chunked streaming path: HW is the reduction grid axis. ----
    chunk = max(128, (max_tile_bytes // (c * itemsize)) // 128 * 128)
    n_steps = pl.cdiv(hw, chunk)
    tile_bytes = c * chunk * itemsize
    f32_temp = c * chunk * 4 if itemsize < 4 else 0
    vmem_limit = min(vmem_cap, 2 * tile_bytes + f32_temp + resident_bytes + (4 << 20))

    out = pl.pallas_call(
        _make_chunked_kernel(hw, chunk, inv_hw, c),
        out_shape=jax.ShapeDtypeStruct((1, e), jnp.float32),
        grid=(n_steps,),
        in_specs=[
            pl.BlockSpec((c, chunk), lambda k: (0, k)),        # stream x over HW
            pl.BlockSpec((c, e), lambda k: (0, 0)),            # resident weight
            pl.BlockSpec((1, e), lambda k: (0, 0)),            # resident bias
        ],
        out_specs=pl.BlockSpec((1, e), lambda k: (0, 0)),      # resident output
        scratch_shapes=[pltpu.VMEM((c, 1), jnp.float32)],      # f32 accumulator
        compiler_params=pltpu.CompilerParams(
            dimension_semantics=("arbitrary",),                # reduction axis
            vmem_limit_bytes=vmem_limit,
        ),
        cost_estimate=cost,
    )(x2d, w_t, b2d)
    return out.reshape(e)


if __name__ == "__main__":
    key = jax.random.PRNGKey(0)

    def ref_fn(x, weight, bias):
        pooled = x.astype(jnp.float32).mean(axis=(2, 3)).reshape(-1)
        return jax.nn.sigmoid(pooled @ weight.T + bias)

    ks = jax.random.split(key, 9)

    # Case 1: tiny feature map -> single-block fast path.
    c_in, num_experts, H, W = 16, 8, 8, 8
    bound = 1.0 / (c_in ** 0.5)
    x = jax.random.normal(ks[0], (1, c_in, H, W), dtype=jnp.float32)
    weight = jax.random.uniform(ks[1], (num_experts, c_in), jnp.float32, -bound, bound)
    bias = jax.random.uniform(ks[2], (num_experts,), jnp.float32, -bound, bound)
    out = jax.block_until_ready(routing_forward(x, weight, bias))
    assert out.shape == (num_experts,)
    assert jnp.allclose(out, ref_fn(x, weight, bias), atol=1e-5)

    # Case 2: moderate map with the default budget -> widened single-block path.
    c2, e2, H2, W2 = 8, 8, 48, 48          # HW = 2304, 72 KiB -> one tile
    b2 = 1.0 / (c2 ** 0.5)
    x2 = jax.random.normal(ks[3], (1, c2, H2, W2), dtype=jnp.float32)
    w2 = jax.random.uniform(ks[4], (e2, c2), jnp.float32, -b2, b2)
    bs2 = jax.random.uniform(ks[5], (e2,), jnp.float32, -b2, b2)
    out2 = jax.block_until_ready(routing_forward(x2, w2, bs2))
    assert out2.shape == (e2,)
    assert jnp.allclose(out2, ref_fn(x2, w2, bs2), atol=1e-5)

    # Case 3: force the chunked path with a masked tail (chunk=1024, 3 steps, tail=256).
    out3 = jax.block_until_ready(routing_forward(x2, w2, bs2, max_tile_bytes=32 * 1024))
    assert jnp.allclose(out3, ref_fn(x2, w2, bs2), atol=1e-5)

    # Case 4: force the chunked path where chunk divides HW exactly (no mask branch).
    c4, e4, H4, W4 = 8, 4, 32, 32          # HW = 1024, chunk = 512, 2 steps
    b4 = 1.0 / (c4 ** 0.5)
    x4 = jax.random.normal(ks[6], (1, c4, H4, W4), dtype=jnp.float32)
    w4 = jax.random.uniform(ks[7], (e4, c4), jnp.float32, -b4, b4)
    bs4 = jax.random.uniform(ks[8], (e4,), jnp.float32, -b4, b4)
    out4 = jax.block_until_ready(routing_forward(x4, w4, bs4, max_tile_bytes=16 * 1024))
    assert jnp.allclose(out4, ref_fn(x4, w4, bs4), atol=1e-5)

    print("KERNEL_OK")
</pallas_src>

<mosaic_0001>
module attributes {stable_mosaic.version = 11 : i64} {
  func.func @kernel(%arg0: i32, %arg1: memref<16x64xf32, #tpu.memory_space<vmem>>, %arg2: memref<16x8xf32, #tpu.memory_space<vmem>>, %arg3: memref<1x8xf32, #tpu.memory_space<vmem>>, %arg4: memref<1x8xf32, #tpu.memory_space<vmem>>) attributes {dimension_semantics = [#tpu.dimension_semantics<arbitrary>], iteration_bounds = array<i64: 1>, scalar_prefetch = 0 : i64, scratch_operands = 0 : i64, tpu.core_type = #tpu.core_type<tc>, window_params = [{pipeline_mode = #tpu.pipeline_mode<synchronous>, transform_indices = @transform_0, window_bounds = array<i64: 16, 64>}, {pipeline_mode = #tpu.pipeline_mode<synchronous>, transform_indices = @transform_1, window_bounds = array<i64: 16, 8>}, {pipeline_mode = #tpu.pipeline_mode<synchronous>, transform_indices = @transform_2, window_bounds = array<i64: 1, 8>}, {pipeline_mode = #tpu.pipeline_mode<synchronous>, transform_indices = @transform_3, window_bounds = array<i64: 1, 8>}]} {
    %c0 = arith.constant 0 : index
    %c0_0 = arith.constant 0 : index
    %0 = vector.load %arg1[%c0, %c0_0] : memref<16x64xf32, #tpu.memory_space<vmem>>, vector<16x64xf32>
    %cst = arith.constant dense<0.000000e+00> : vector<16xf32>
    %1 = vector.multi_reduction <add>, %0, %cst [1] : vector<16x64xf32> to vector<16xf32>
    %2 = vector.shape_cast %1 : vector<16xf32> to vector<16x1xf32>
    %cst_1 = arith.constant 1.562500e-02 : f32
    %3 = vector.broadcast %cst_1 : f32 to vector<16x1xf32>
    %4 = arith.mulf %2, %3 : vector<16x1xf32>
    %c0_2 = arith.constant 0 : index
    %c0_3 = arith.constant 0 : index
    %5 = vector.load %arg2[%c0_2, %c0_3] : memref<16x8xf32, #tpu.memory_space<vmem>>, vector<16x8xf32>
    %6 = vector.broadcast %4 : vector<16x1xf32> to vector<16x8xf32>
    %7 = arith.mulf %6, %5 : vector<16x8xf32>
    %cst_4 = arith.constant dense<0.000000e+00> : vector<8xf32>
    %8 = vector.multi_reduction <add>, %7, %cst_4 [0] : vector<16x8xf32> to vector<8xf32>
    %9 = vector.shape_cast %8 : vector<8xf32> to vector<1x8xf32>
    %c0_5 = arith.constant 0 : index
    %c0_6 = arith.constant 0 : index
    %10 = vector.load %arg3[%c0_5, %c0_6] : memref<1x8xf32, #tpu.memory_space<vmem>>, vector<1x8xf32>
    %11 = arith.addf %9, %10 : vector<1x8xf32>
    %12 = arith.negf %11 : vector<1x8xf32>
    %13 = math.exp %12 : vector<1x8xf32>
    %cst_7 = arith.constant 1.000000e+00 : f32
    %14 = vector.broadcast %cst_7 : f32 to vector<1x8xf32>
    %15 = arith.addf %14, %13 : vector<1x8xf32>
    %16 = arith.divf %14, %15 : vector<1x8xf32>
    %c0_8 = arith.constant 0 : index
    %c0_9 = arith.constant 0 : index
    %17 = vector.load %arg4[%c0_8, %c0_9] : memref<1x8xf32, #tpu.memory_space<vmem>>, vector<1x8xf32>
    tpu.vector_store %arg4[%c0_8, %c0_9], %16 {strides = array<i32>} : memref<1x8xf32, #tpu.memory_space<vmem>>, vector<1x8xf32>,
    return
  }
  func.func @transform_0(%arg0: i32) -> (i32, i32) {
    %c0_i32 = arith.constant 0 : i32
    %c0_i32_0 = arith.constant 0 : i32
    %c0_i32_1 = arith.constant 0 : i32
    return %c0_i32, %c0_i32_0 : i32, i32
  }
  func.func @transform_1(%arg0: i32) -> (i32, i32) {
    %c0_i32 = arith.constant 0 : i32
    %c0_i32_0 = arith.constant 0 : i32
    %c0_i32_1 = arith.constant 0 : i32
    return %c0_i32, %c0_i32_0 : i32, i32
  }
  func.func @transform_2(%arg0: i32) -> (i32, i32) {
    %c0_i32 = arith.constant 0 : i32
    %c0_i32_0 = arith.constant 0 : i32
    %c0_i32_1 = arith.constant 0 : i32
    return %c0_i32, %c0_i32_0 : i32, i32
  }
  func.func @transform_3(%arg0: i32) -> (i32, i32) {
    %c0_i32 = arith.constant 0 : i32
    %c0_i32_0 = arith.constant 0 : i32
    %c0_i32_1 = arith.constant 0 : i32
    return %c0_i32, %c0_i32_0 : i32, i32
  }
}

</mosaic_0001>

<bundles_post_ra>
// kernel: tpu_custom_call.1
= control target key start
LH: loop header
LB: loop body
LE: loop exit
PB: predicated region body
PF: predicated region fallthrough
CT: control target
= control target key end

     0   :  { %vm17_vm0 = vcmask 523264   ;;  %s142_s0 = inlined_call_operand.vmem [shape: f32[16,64], index: 0, kind: input, shape index: {}]   ;;  %s143_s1 = inlined_call_operand.vmem [shape: f32[16,8], index: 1, kind: input, shape index: {}]   ;;  %s144_s2 = inlined_call_operand.vmem [shape: f32[1,8], index: 2, kind: input, shape index: {}]   ;;  %s145_s3 = inlined_call_operand.hbm [shape: f32[1,8], index: 3, kind: output, shape index: {}]  }
   0x1   :  { %v15_v0 = vld [vmem:[%s142_s0] sm:$0xff]  ;;  %v16_v1 = vld [vmem:[%s142_s0 + $0x8] sm:$0xff] }
   0x2   :  { %v18_v2 = vsel %vm17_vm0, %v15_v0, 0.0 }
   0x3   :  { %8 = vsyncpa [#allocation3], 0  ;;  %19 = vadd.xlane.f32.xlu0 %v18_v2  ;;  %v21_v3 = vsel %vm17_vm0, %v16_v1, 0.0  ;;  %v26_v6 = vld [vmem:[%s143_s1] sm:$0xff]  ;;  %v27_v7 = vld [vmem:[%s143_s1 + $0x8] sm:$0xff]  ;;  %vm30_vm1 = vcmask 64512  }
   0x4   :  { %v40_v20 = vld [vmem:[%s144_s2] sm:$0x1]  ;;  %s94_s1 = smov [#allocation2]   ;;  %vm48_vm2 = vcmask 57344  }
   0x5   :  { %s56_s21 = sshll.u32 %s94_s1, 4  ;;  %s57_s21 = int_to_ptr.vmem [resolvable:$true] %s56_s21 }
   0x6   :  { %s70_s22 = scalar_lea.vmem %s57_s21, 16  ;;  %s74_s23 = scalar_lea.vmem %s57_s21, 32 }
   0x7   :  { %22 = vadd.xlane.f32.xlu0 %v21_v3  ;;  %p71_p0 = scmp.ne.s32.totalorder %s57_s21, %s70_s22  ;;  %p75_p1 = scmp.lt.s32.totalorder %s57_s21, %s57_s21 }
   0x8   :  { %p76_p2 = scmp.lt.s32.totalorder %s74_s23, %s70_s22 }
   0xa   :  { %p77_p3 = por %p76_p2, %p75_p1 }
   0xc   :  { %p78_p4 = pnand %p77_p3, %p71_p0 }
  0x90   :  { %v20_v4 = vpop.xlane.xlu0 %19 }
  0x91   :  { %v24_v5 = vmul.f32 0.015625, %v20_v4 }
  0x93   :  { %v28_v9 = vmul.f32 %v26_v6, %v24_v5 }
  0x94   :  { %v23_v8 = vpop.xlane.xlu0 %22 }
  0x95   :  { %v25_v10 = vmul.f32 0.015625, %v23_v8  ;;  %v31_v12 = vsel %vm30_vm1, %v28_v9, 0.0 }
  0x97   :  { %v29_v11 = vmul.f32 %v27_v7, %v25_v10 }
  0x99   :  { %v32_v13 = vsel %vm30_vm1, %v29_v11, 0.0 }
  0x9a   :  { %v33_v14 = vadd.f32 %v32_v13, %v31_v12 }
  0x9c   :  { %v34_v15 = vrot.slane %v33_v14, 4 }
  0x9e   :  { %v35_v16 = vadd.f32 %v34_v15, %v33_v14 }
  0xa0   :  { %v36_v17 = vrot.slane %v35_v16, 2 }
  0xa2   :  { %v37_v18 = vadd.f32 %v36_v17, %v35_v16 }
  0xa4   :  { %v38_v19 = vrot.slane %v37_v18, 1 }
  0xa6   :  { %v39_v21 = vadd.f32 %v38_v19, %v37_v18 }
  0xa8   :  { %v41_v22 = vadd.f32 %v40_v20, %v39_v21 }
  0xaa   :  { %v64_v23 = vmul.f32 -1.442695, %v41_v22 }
  0xac   :  { %66 = vpow2.f32 %v64_v23 }
  0xb6   :  { %v67_v24 = vpop.eup %66 }
  0xb7   :  { %v45_v25 = vadd.f32 1.0, %v67_v24 }
  0xb9   :  { %68 = vrcp.f32 %v45_v25 }
  0xc3   :  { %v69_v26 = vpop.eup %68 }
  0xc4   :  { %49 = vst.msk [vmem:[#allocation2] sm:$0x1] %vm48_vm2, %v69_v26 }
  0xc5   :  { %81 = shalt.err (!%p78_p4)
}
  0xc6   :  { %s82_s25 = scalar_lea.hbm %s145_s3, 16 }
  0xc7   :  { %p83_p5 = scmp.ne.s32.totalorder %s145_s3, %s82_s25  ;;  %p86_p6 = scmp.lt.u32.totalorder %s82_s25, %s145_s3 }
  0xc9   :  { %p88_p7 = pnand %p86_p6, %p83_p5 }
  0xcb   :  { %91 = shalt.err (!%p88_p7)
}
  0xcc   :  { %59 = dma.vmem_to_hbm [thread:$0]  %s57_s21, 16, %s145_s3, [#allocation3]  }
  0xcd   :  { %92 = dma.done.wait [#allocation3], 16  }
  0xce   :  { %93 = vsyncadd [#allocation3], 4294967280 }
  0xcf   :  { %63 = vsyncpa [#allocation3], 1 }

</bundles_post_ra>
